<compile_context>
chip_gen: v5e
topology: v5e:2x2
jax: 0.10.0
libtpu: 0.0.40
codegen_flags: <defaults>
</compile_context>

<pallas_src>
import functools

import numpy as np
import jax
import jax.numpy as jnp
from jax.experimental import pallas as pl
from jax.experimental.pallas import tpu as pltpu


def _round_up(n, m):
    return ((n + m - 1) // m) * m


def _iris_mlp_kernel(x_ref, w_ref, b_ref, b3_ref, o_ref, *, dims, row_off, mxu_dtype):
    """One batch tile.  x_ref: (tb, IN) batch-major.  o_ref: (tb, C) batch-major.
    w_ref: packed weights (rows 8-aligned): [W1 (H1,IN); W2 (H2,H1); W3.T (H2,C)].
    b_ref: packed f32 biases [b1; b2] as a column.  b3_ref: (1, C) f32 row."""
    in_f, h1_f, h2_f, n_cls = dims
    r1, r2, r3 = row_off

    xc = x_ref[...].astype(mxu_dtype)                     # (tb, IN)
    w1 = w_ref[r1:r1 + h1_f, 0:in_f]                      # (H1, IN)
    w2 = w_ref[r2:r2 + h2_f, 0:h1_f]                      # (H2, H1)
    w3t = w_ref[r3:r3 + h2_f, 0:n_cls]                    # (H2, C) == W3.T

    # Layer 1 (MXU): contract the shared IN axis of W1 (H1,IN) and x (tb,IN) -> (H1, tb).
    # Feature-major result: batch stays on the 128-lane axis; the x "transpose" is fused
    # into the matmul (trans_b) and never materialized.
    h1 = jax.lax.dot_general(w1, xc, (((1,), (1,)), ((), ())),
                             preferred_element_type=jnp.float32)
    h1 = jnp.maximum(h1 + b_ref[r1:r1 + h1_f, :], 0.0)

    # Layer 2 (MXU): (H2, H1) @ (H1, tb) -> (H2, tb), f32 accumulate.
    h2 = jax.lax.dot_general(w2, h1.astype(mxu_dtype), (((1,), (0,)), ((), ())),
                             preferred_element_type=jnp.float32)
    h2 = jnp.maximum(h2 + b_ref[r2:r2 + h2_f, :], 0.0)

    # Layer 3 (MXU): contract the H2 axis of h2 (H2,tb) and W3.T (H2,C) -> (tb, C).
    # Logits come out batch-major, so the store needs no wrapper-side transpose.
    logits = jax.lax.dot_general(h2.astype(mxu_dtype), w3t, (((0,), (0,)), ((), ())),
                                 preferred_element_type=jnp.float32)
    o_ref[...] = (logits + b3_ref[...]).astype(o_ref.dtype)


def _pick_batch_tile(batch, bytes_per_sample, *, vmem_budget_bytes=20 * 2**20, max_tile=8192):
    """Largest power-of-two batch tile (>=128 lanes) fitting the VMEM budget, capped at
    max_tile, and small enough that the 'parallel' grid axis gets >= 2 steps (v7x has
    2 TensorCores; neutral on single-TC v5e/v6e)."""
    tile = 128
    while tile * 2 <= max_tile and tile * 2 * bytes_per_sample <= vmem_budget_bytes:
        tile *= 2
    while tile > 128 and 2 * tile > max(batch, 256):
        tile //= 2
    return tile


def iris_net_forward(x, params, *, batch_tile=None, mxu_dtype=jnp.bfloat16, input_dtype=None):
    """Forward pass matching PyTorch IrisNet: x (B, input_size) -> logits (B, num_classes).

    mxu_dtype:   dtype of the matmul operands (accumulation is always f32).  bf16 is the fast
                 path on v5e/v6e/v7x; pass jnp.float32 to keep full-precision operands.
    input_dtype: optionally cast x (and the returned logits) to this dtype before the kernel,
                 e.g. jnp.bfloat16 to halve the x DMA on bandwidth-poor v5e.  The cast happens
                 before any accumulation (deliberate accuracy trade-off).
    """
    if input_dtype is not None:
        x = x.astype(input_dtype)
    batch, in_f = x.shape
    w1, b1 = params["W1"], params["b1"]
    w2, b2 = params["W2"], params["b2"]
    w3, b3 = params["W3"], params["b3"]
    h1_f, h2_f, n_cls = w1.shape[0], w2.shape[0], w3.shape[0]
    out_dtype = x.dtype

    # ---- Pack the six tiny constants into two resident VMEM operands (+ one bias row).
    # Row blocks are 8-aligned so the in-kernel static slices stay sublane-tile aligned.
    r1 = 0
    r2 = _round_up(h1_f, 8)
    r3 = r2 + _round_up(h2_f, 8)
    n_rows = r3 + _round_up(h2_f, 8)
    n_cols = max(in_f, h1_f, n_cls)
    wpack = jnp.zeros((n_rows, n_cols), mxu_dtype)
    wpack = wpack.at[r1:r1 + h1_f, 0:in_f].set(w1.astype(mxu_dtype))
    wpack = wpack.at[r2:r2 + h2_f, 0:h1_f].set(w2.astype(mxu_dtype))
    wpack = wpack.at[r3:r3 + h2_f, 0:n_cls].set(w3.T.astype(mxu_dtype))   # store W3 pre-transposed
    bpack = jnp.zeros((r3, 1), jnp.float32)
    bpack = bpack.at[r1:r1 + h1_f, 0].set(b1.astype(jnp.float32))
    bpack = bpack.at[r2:r2 + h2_f, 0].set(b2.astype(jnp.float32))
    b3row = b3.astype(jnp.float32).reshape(1, n_cls)

    # ---- VMEM-budgeted batch tile.  Per-sample VMEM is dominated by the lane padding of the
    # narrow (tb, IN)/(tb, C) pipeline blocks: 128*itemsize per double-buffered block, plus the
    # feature-major f32 intermediates and the batch-major logits temp.
    isz = lambda dt: np.dtype(dt).itemsize
    bytes_per_sample = (2 * 128 * isz(x.dtype)                       # x blocks (double-buffered)
                        + 2 * 128 * isz(out_dtype)                   # logits blocks
                        + 128 * isz(mxu_dtype)                       # cast copy of the x block
                        + (r2 + _round_up(h2_f, 8)) * (4 + isz(mxu_dtype))  # h1/h2 (+ casts)
                        + 128 * 4)                                   # batch-major f32 logits temp
    tb = batch_tile if batch_tile is not None else _pick_batch_tile(batch, bytes_per_sample)
    assert tb % 128 == 0, "batch tile must be a multiple of 128 (lane-aligned)"

    # ---- Pad the batch so it tiles evenly and the parallel grid has >= 2 steps (both v7x
    # TensorCores).  Padded rows are sliced off the output; the pad costs an extra HBM pass
    # over x only when batch % tb != 0.
    n_steps = max(2, (batch + tb - 1) // tb)
    batch_pad = n_steps * tb
    x_in = x if batch_pad == batch else jnp.pad(x, ((0, batch_pad - batch), (0, 0)))

    kernel = functools.partial(_iris_mlp_kernel, dims=(in_f, h1_f, h2_f, n_cls),
                               row_off=(r1, r2, r3), mxu_dtype=mxu_dtype)
    out = pl.pallas_call(
        kernel,
        out_shape=jax.ShapeDtypeStruct((batch_pad, n_cls), out_dtype),
        grid_spec=pltpu.PrefetchScalarGridSpec(
            num_scalar_prefetch=0,
            grid=(n_steps,),
            in_specs=[
                pl.BlockSpec((tb, in_f), lambda i: (i, 0)),     # batch-major x tile (no wrapper transpose)
                pl.BlockSpec(wpack.shape, lambda i: (0, 0)),    # resident packed weights (fetched once)
                pl.BlockSpec(bpack.shape, lambda i: (0, 0)),    # resident packed biases (layers 1-2)
                pl.BlockSpec(b3row.shape, lambda i: (0, 0)),    # resident layer-3 bias row
            ],
            out_specs=pl.BlockSpec((tb, n_cls), lambda i: (i, 0)),  # batch-major logits tile
        ),
        compiler_params=pltpu.CompilerParams(
            dimension_semantics=("parallel",),          # shard batch tiles across TCs (v7x)
            vmem_limit_bytes=32 * 1024 * 1024,          # consistent with the ~13-20 MiB tile budget
        ),
    )(x_in, wpack, bpack, b3row)
    return out if batch_pad == batch else out[:batch]


def init_iris_params(key, input_size, hidden1_size, hidden2_size, num_classes):
    """PyTorch nn.Linear default init: U[-1/sqrt(fan_in), 1/sqrt(fan_in)], W: (out, in)."""
    ks = jax.random.split(key, 6)

    def linear(kw, kb, fan_in, fan_out):
        bound = 1.0 / jnp.sqrt(jnp.float32(fan_in))
        W = jax.random.uniform(kw, (fan_out, fan_in), jnp.float32, -bound, bound)
        b = jax.random.uniform(kb, (fan_out,), jnp.float32, -bound, bound)
        return W, b

    W1, b1 = linear(ks[0], ks[1], input_size, hidden1_size)
    W2, b2 = linear(ks[2], ks[3], hidden1_size, hidden2_size)
    W3, b3 = linear(ks[4], ks[5], hidden2_size, num_classes)
    return {"W1": W1, "b1": b1, "W2": W2, "b2": b2, "W3": W3, "b3": b3}


def _reference_f32(x, params):
    h1 = jnp.maximum(x @ params["W1"].T + params["b1"], 0.0)
    h2 = jnp.maximum(h1 @ params["W2"].T + params["b2"], 0.0)
    return h2 @ params["W3"].T + params["b3"]


def _reference_matched(x, params, mxu_dtype):
    """Pure-JAX reference using the same bf16-operand / f32-accumulate casts as the kernel."""
    def lin(h, W, b):
        y = jnp.dot(h.astype(mxu_dtype), W.astype(mxu_dtype).T,
                    preferred_element_type=jnp.float32)
        return y + b.astype(jnp.float32)

    h1 = jnp.maximum(lin(x, params["W1"], params["b1"]), 0.0)
    h2 = jnp.maximum(lin(h1, params["W2"], params["b2"]), 0.0)
    return lin(h2, params["W3"], params["b3"])


if __name__ == "__main__":
    # Iris-like sizes: 4 features, hidden 32 / 16, 3 classes.
    input_size, hidden1, hidden2, num_classes = 4, 32, 16, 3

    key = jax.random.PRNGKey(0)
    kp, kx1, kx2 = jax.random.split(key, 3)
    params = init_iris_params(kp, input_size, hidden1, hidden2, num_classes)

    # Case 1: lane-aligned batch, default bf16 MXU operands, jitted end-to-end.
    x1 = jax.random.normal(kx1, (256, input_size), jnp.float32)
    fwd = jax.jit(lambda x: iris_net_forward(x, params))
    out1 = jax.block_until_ready(fwd(x1))
    assert out1.shape == (256, num_classes)
    assert jnp.allclose(out1, _reference_matched(x1, params, jnp.bfloat16), atol=1e-4, rtol=1e-4)
    assert jnp.allclose(out1, _reference_f32(x1, params), atol=3e-2, rtol=3e-2)

    # Case 2: batch not a multiple of 128 -> pad-to-tile path (no single-block fallback).
    x2 = jax.random.normal(kx2, (100, input_size), jnp.float32)
    out2 = jax.block_until_ready(iris_net_forward(x2, params))
    assert out2.shape == (100, num_classes)
    assert jnp.allclose(out2, _reference_matched(x2, params, jnp.bfloat16), atol=1e-4, rtol=1e-4)
    assert jnp.allclose(out2, _reference_f32(x2, params), atol=3e-2, rtol=3e-2)

    # Case 3: keep MXU operands in f32 (higher-precision option from the review).
    out3 = jax.block_until_ready(iris_net_forward(x1, params, mxu_dtype=jnp.float32))
    assert out3.shape == (256, num_classes)
    assert jnp.allclose(out3, _reference_f32(x1, params), atol=3e-2, rtol=3e-2)

    # Case 4: bf16 input DMA (halves the x read; helpful on bandwidth-poor v5e).
    out4 = jax.block_until_ready(iris_net_forward(x1, params, input_dtype=jnp.bfloat16))
    assert out4.shape == (256, num_classes)
    assert jnp.allclose(out4.astype(jnp.float32), _reference_f32(x1, params), atol=1e-1, rtol=1e-1)

    print("KERNEL_OK")
</pallas_src>

<mosaic_0001>
module attributes {stable_mosaic.version = 11 : i64} {
  func.func @_iris_mlp_kernel(%arg0: i32, %arg1: memref<128x4xf32, #tpu.memory_space<vmem>>, %arg2: memref<64x32xbf16, #tpu.memory_space<vmem>>, %arg3: memref<48x1xf32, #tpu.memory_space<vmem>>, %arg4: memref<1x3xf32, #tpu.memory_space<vmem>>, %arg5: memref<128x3xf32, #tpu.memory_space<vmem>>) attributes {dimension_semantics = [#tpu.dimension_semantics<parallel>], iteration_bounds = array<i64: 2>, scalar_prefetch = 0 : i64, scratch_operands = 0 : i64, tpu.core_type = #tpu.core_type<tc>, window_params = [{transform_indices = @transform_0, window_bounds = array<i64: 128, 4>}, {pipeline_mode = #tpu.pipeline_mode<synchronous>, transform_indices = @transform_1, window_bounds = array<i64: 64, 32>}, {pipeline_mode = #tpu.pipeline_mode<synchronous>, transform_indices = @transform_2, window_bounds = array<i64: 48, 1>}, {pipeline_mode = #tpu.pipeline_mode<synchronous>, transform_indices = @transform_3, window_bounds = array<i64: 1, 3>}, {transform_indices = @transform_4, window_bounds = array<i64: 128, 3>}]} {
    %c0 = arith.constant 0 : index
    %c0_0 = arith.constant 0 : index
    %0 = vector.load %arg1[%c0, %c0_0] : memref<128x4xf32, #tpu.memory_space<vmem>>, vector<128x4xf32>
    %1 = arith.truncf %0 : vector<128x4xf32> to vector<128x4xbf16>
    %c0_1 = arith.constant 0 : index
    %c0_2 = arith.constant 0 : index
    %2 = vector.load %arg2[%c0_1, %c0_2] : memref<64x32xbf16, #tpu.memory_space<vmem>>, vector<32x4xbf16>
    %c32 = arith.constant 32 : index
    %c0_3 = arith.constant 0 : index
    %3 = vector.load %arg2[%c32, %c0_3] : memref<64x32xbf16, #tpu.memory_space<vmem>>, vector<16x32xbf16>
    %c48 = arith.constant 48 : index
    %c0_4 = arith.constant 0 : index
    %4 = vector.load %arg2[%c48, %c0_4] : memref<64x32xbf16, #tpu.memory_space<vmem>>, vector<16x3xbf16>
    %cst = arith.constant dense<0.000000e+00> : vector<32x128xf32>
    %5 = tpu.matmul %2, %1, %cst {dimension_numbers = #tpu.dot_dimension_numbers<[1], [1], [0], [0], [0, 0, 1, 0], [], []>} : vector<32x4xbf16>, vector<128x4xbf16>, vector<32x128xf32> -> vector<32x128xf32>
    %c0_5 = arith.constant 0 : index
    %c0_6 = arith.constant 0 : index
    %6 = vector.load %arg3[%c0_5, %c0_6] : memref<48x1xf32, #tpu.memory_space<vmem>>, vector<32x1xf32>
    %7 = vector.broadcast %6 : vector<32x1xf32> to vector<32x128xf32>
    %8 = arith.addf %5, %7 : vector<32x128xf32>
    %cst_7 = arith.constant 0.000000e+00 : f32
    %9 = vector.broadcast %cst_7 : f32 to vector<32x128xf32>
    %10 = arith.maximumf %8, %9 : vector<32x128xf32>
    %11 = arith.truncf %10 : vector<32x128xf32> to vector<32x128xbf16>
    %cst_8 = arith.constant dense<0.000000e+00> : vector<16x128xf32>
    %12 = tpu.matmul %3, %11, %cst_8 {dimension_numbers = #tpu.dot_dimension_numbers<[1], [0], [0], [1], [0, 0, 1, 1], [], []>} : vector<16x32xbf16>, vector<32x128xbf16>, vector<16x128xf32> -> vector<16x128xf32>
    %c32_9 = arith.constant 32 : index
    %c0_10 = arith.constant 0 : index
    %13 = vector.load %arg3[%c32_9, %c0_10] : memref<48x1xf32, #tpu.memory_space<vmem>>, vector<16x1xf32>
    %14 = vector.broadcast %13 : vector<16x1xf32> to vector<16x128xf32>
    %15 = arith.addf %12, %14 : vector<16x128xf32>
    %cst_11 = arith.constant 0.000000e+00 : f32
    %16 = vector.broadcast %cst_11 : f32 to vector<16x128xf32>
    %17 = arith.maximumf %15, %16 : vector<16x128xf32>
    %18 = arith.truncf %17 : vector<16x128xf32> to vector<16x128xbf16>
    %cst_12 = arith.constant dense<0.000000e+00> : vector<128x3xf32>
    %19 = tpu.matmul %18, %4, %cst_12 {dimension_numbers = #tpu.dot_dimension_numbers<[0], [0], [1], [1], [0, 1, 1, 1], [], []>} : vector<16x128xbf16>, vector<16x3xbf16>, vector<128x3xf32> -> vector<128x3xf32>
    %c0_13 = arith.constant 0 : index
    %c0_14 = arith.constant 0 : index
    %20 = vector.load %arg4[%c0_13, %c0_14] : memref<1x3xf32, #tpu.memory_space<vmem>>, vector<1x3xf32>
    %21 = vector.broadcast %20 : vector<1x3xf32> to vector<128x3xf32>
    %22 = arith.addf %19, %21 : vector<128x3xf32>
    %c0_15 = arith.constant 0 : index
    %c0_16 = arith.constant 0 : index
    %23 = vector.load %arg5[%c0_15, %c0_16] : memref<128x3xf32, #tpu.memory_space<vmem>>, vector<128x3xf32>
    tpu.vector_store %arg5[%c0_15, %c0_16], %22 {strides = array<i32>} : memref<128x3xf32, #tpu.memory_space<vmem>>, vector<128x3xf32>,
    return
  }
  func.func @transform_0(%arg0: i32) -> (i32, i32) {
    %c0_i32 = arith.constant 0 : i32
    %c0_i32_0 = arith.constant 0 : i32
    return %arg0, %c0_i32 : i32, i32
  }
  func.func @transform_1(%arg0: i32) -> (i32, i32) {
    %c0_i32 = arith.constant 0 : i32
    %c0_i32_0 = arith.constant 0 : i32
    %c0_i32_1 = arith.constant 0 : i32
    return %c0_i32, %c0_i32_0 : i32, i32
  }
  func.func @transform_2(%arg0: i32) -> (i32, i32) {
    %c0_i32 = arith.constant 0 : i32
    %c0_i32_0 = arith.constant 0 : i32
    %c0_i32_1 = arith.constant 0 : i32
    return %c0_i32, %c0_i32_0 : i32, i32
  }
  func.func @transform_3(%arg0: i32) -> (i32, i32) {
    %c0_i32 = arith.constant 0 : i32
    %c0_i32_0 = arith.constant 0 : i32
    %c0_i32_1 = arith.constant 0 : i32
    return %c0_i32, %c0_i32_0 : i32, i32
  }
  func.func @transform_4(%arg0: i32) -> (i32, i32) {
    %c0_i32 = arith.constant 0 : i32
    %c0_i32_0 = arith.constant 0 : i32
    return %arg0, %c0_i32 : i32, i32
  }
}

</mosaic_0001>

<bundles_post_ra>
// kernel: _lambda_.1
= control target key start
LH: loop header
LB: loop body
LE: loop exit
PB: predicated region body
PF: predicated region fallthrough
CT: control target
= control target key end

     0   :  { %s625_s15 = smov 0   ;;  %s752_s0 = inlined_call_operand.vmem [shape: f32[256,4], index: 0, kind: input, shape index: {}]   ;;  %s753_s1 = inlined_call_operand.vmem [shape: bf16[64,32], index: 1, kind: input, shape index: {}]   ;;  %s754_s2 = inlined_call_operand.vmem [shape: f32[48,1], index: 2, kind: input, shape index: {}]   ;;  %s755_s3 = inlined_call_operand.vmem [shape: f32[1,3], index: 3, kind: input, shape index: {}]   ;;  %s756_s4 = inlined_call_operand.vmem [shape: f32[256,3], index: 4, kind: output, shape index: {}]  }
   0x1 LB: > { %s535_s16 = sadd.s32 4294967295, %s597_s15   ;;  %p539_p0 = scmp.ge.s32.totalorder %s597_s15, 1  ;;  %s597_s15 = sphi %s625_s15, %s14_s15  }
   0x2   : > { %p163_p1 = scmp.lt.s32.totalorder %s597_s15, 3 }
   0x4   : > { %p164_p2 = pnand %p539_p0, %p163_p1 }
   0x5   : > { %s540_s17 = sshll.u32 (!%p164_p2), %s535_s16, 4 }
   0x6   : > { %167 = sbr.rel (%p164_p2) target bundleno = 812 (0x32c), region = 36  ;;  %p190_p3 = scmp.lt.s32.totalorder (!%p164_p2), %s540_s17, 31 }
   0xb   : > { %s758_s17 = smov (!%p190_p3, %s540_s17), 31  ;;  %vm268_vm0 = vcmask 31744   ;;  %v234_v22 = vld [vmem:[%s754_s2] sm:$0xff]  ;;  %v599_v23 = vmov 0   ;;  %v236_v32 = vld [vmem:[%s754_s2 + $0x10] sm:$0xff]  ;;  %v235_v33 = vld [vmem:[%s754_s2 + $0x8] sm:$0xff] }
   0xc   : > { %s541_s18 = sshll.u32 %s758_s17, 3  ;;  %588 = vset.pattern.permute.xlu1 %v599_v23  ;;  %587 = vset.pattern.permute.xlu0 %v599_v23  ;;  %v237_v36 = vld [vmem:[%s754_s2 + $0x18] sm:$0xff]  ;;  %v573_v37 = vld [vmem:[%s753_s1] sm:$0xff]  ;;  %v574_v38 = vld [vmem:[%s753_s1 + $0x8] sm:$0xff]  ;;  %vm341_vm1 = vcmask 261120   ;;  %vm388_vm2 = vcmask 130048  }
   0xd   : > { %s641_s21 = scalar_lea.vmem %s752_s0, %s541_s18  ;;  %240 = vperm.xlu1 %588, %v234_v22   ;;  %589 = vset.pattern.permute.xlu2 %v599_v23  ;;  %v324_v40 = vld [vmem:[%s754_s2 + $0x20] sm:$0xff]  ;;  %v325_v43 = vld [vmem:[%s754_s2 + $0x28] sm:$0xff]  ;;  %v575_v59 = vld [vmem:[%s753_s1 + $0x10] sm:$0xff]  ;;  %s715_s23 = scalar_lea.vmem %s756_s4, %s541_s18  ;;  %vm462_vm3 = vcmask 23552  }
   0xe   : > { %v216_v0 = vld [vmem:[%s641_s21 + $0x70] sm:$0xff]  ;;  %v217_v1 = vld [vmem:[%s641_s21 + $0x78] sm:$0xff]  ;;  %v214_v3 = vld [vmem:[%s641_s21 + $0x60] sm:$0xff]  ;;  %250 = vperm.xlu0 %587, %v236_v32   ;;  %328 = vperm.xlu2 %589, %v324_v40  }
   0xf   : > { %v225_v2 = vpack.c.bf16 %v217_v1, %v216_v0  ;;  %v215_v4 = vld [vmem:[%s641_s21 + $0x68] sm:$0xff]  ;;  %v212_v8 = vld [vmem:[%s641_s21 + $0x50] sm:$0xff]  ;;  %v213_v9 = vld [vmem:[%s641_s21 + $0x58] sm:$0xff] }
  0x10   : > { %v224_v6 = vpack.c.bf16 %v215_v4, %v214_v3  ;;  %v223_v10 = vpack.c.bf16 %v213_v9, %v212_v8  ;;  %v210_v12 = vld [vmem:[%s641_s21 + $0x40] sm:$0xff]  ;;  %v211_v13 = vld [vmem:[%s641_s21 + $0x48] sm:$0xff]  ;;  %v208_v16 = vld [vmem:[%s641_s21 + $0x30] sm:$0xff] }
  0x11   : > { %v297_v5 = vsel %vm268_vm0, %v225_v2, 0  ;;  %v222_v14 = vpack.c.bf16 %v211_v13, %v210_v12  ;;  %v209_v17 = vld [vmem:[%s641_s21 + $0x38] sm:$0xff]  ;;  %v206_v20 = vld [vmem:[%s641_s21 + $0x20] sm:$0xff]  ;;  %v207_v21 = vld [vmem:[%s641_s21 + $0x28] sm:$0xff] }
  0x12   : > { %299 = vmatpush.bf16.xpose.msra.mxu0 %v297_v5  ;;  %v294_v7 = vsel %vm268_vm0, %v224_v6, 0  ;;  %v291_v11 = vsel %vm268_vm0, %v223_v10, 0  ;;  %v221_v18 = vpack.c.bf16 %v209_v17, %v208_v16  ;;  %v220_v24 = vpack.c.bf16 %v207_v21, %v206_v20  ;;  %v204_v26 = vld [vmem:[%s641_s21 + $0x10] sm:$0xff]  ;;  %v205_v27 = vld [vmem:[%s641_s21 + $0x18] sm:$0xff]  ;;  %v202_v30 = vld [vmem:[%s641_s21] sm:$0xff] }
  0x13   : > { %v288_v15 = vsel %vm268_vm0, %v222_v14, 0  ;;  %v219_v28 = vpack.c.bf16 %v205_v27, %v204_v26  ;;  %v203_v31 = vld [vmem:[%s641_s21 + $0x8] sm:$0xff]  ;;  %v576_v60 = vld [vmem:[%s753_s1 + $0x18] sm:$0xff]  ;;  %v590_v14 = vld [vmem:[%s755_s3] ss:$0 sm:$0xff] }
  0x14   : > { %v285_v19 = vsel %vm268_vm0, %v221_v18, 0  ;;  %v282_v25 = vsel %vm268_vm0, %v220_v24, 0  ;;  %v218_v34 = vpack.c.bf16 %v203_v31, %v202_v30  ;;  %420 = vmatpush.bf16.msra.mxu2 %v576_v60  ;;  %577 = vmatpush.bf16.msra.mxu3 %v576_v60 }
  0x15   : > { %v279_v29 = vsel %vm268_vm0, %v219_v28, 0  ;;  %245 = vperm.xlu1 %588, %v235_v33  }
  0x16   : > { %v276_v35 = vsel %vm268_vm0, %v218_v34, 0  ;;  %255 = vperm.xlu0 %587, %v237_v36   ;;  %333 = vperm.xlu2 %589, %v325_v43  }
  0x1a   : > { %300 = vmatpush.bf16.xpose.msra.mxu0 %v294_v7 }
  0x22   : > { %301 = vmatpush.bf16.xpose.msra.mxu0 %v291_v11 }
  0x2a   : > { %302 = vmatpush.bf16.xpose.msra.mxu0 %v288_v15 }
  0x32   : > { %303 = vmatpush.bf16.xpose.msra.mxu0 %v285_v19 }
  0x3a   : > { %304 = vmatpush.bf16.xpose.msra.mxu0 %v282_v25 }
  0x42   : > { %305 = vmatpush.bf16.xpose.msra.mxu0 %v279_v29 }
  0x4a   : > { %306 = vmatpush.bf16.xpose.msra.mxu0 %v276_v35 }
  0x51   : > { %552 = vmatmul.msk.bf16.vlgmr.msra.gmra.mxu0 %vm268_vm0, %v573_v37 }
  0x61   : > { %553 = vmatmul.msk.bf16.gmra.mxu0 %vm268_vm0, %v574_v38 }
  0x68   : > { %v329_v61 = vpop.permute.xlu2 %328 }
  0x70   : > { %v334_v0 = vpop.permute.xlu2 %333 }
  0x7f   : > { %v241_v42 = vpop.permute.xlu1 %240 }
  0x80   : > { %v251_v44 = vpop.permute.xlu0 %250 }
  0x87   : > { %v246_v46 = vpop.permute.xlu1 %245 }
  0x88   : > { %v256_v48 = vpop.permute.xlu0 %255 }
  0xce   : > { %v308_v39 = vpop.f32.mrf.mxu0 }
  0xcf   : > { %v309_v52 = vadd.f32 %v308_v39, %v241_v42 }
  0xd1   : > { %v318_v57 = vmax.f32 %v309_v52, 0.0 }
  0xd6   : > { %v310_v41 = vpop.f32.mrf.mxu0 }
  0xd7   : > { %v311_v50 = vadd.f32 %v310_v41, %v246_v46 }
  0xd9   : > { %v319_v55 = vmax.f32 %v311_v50, 0.0 }
  0xdb   : > { %v322_v58 = vpack.c.bf16 %v319_v55, %v318_v57 }
  0xde   : > { %v313_v45 = vpop.f32.mrf.mxu0 }
  0xdf   : > { %v314_v47 = vadd.f32 %v313_v45, %v251_v44 }
  0xe1   : > { %v320_v53 = vmax.f32 %v314_v47, 0.0 }
  0xe6   : > { %v315_v49 = vpop.f32.mrf.mxu0 }
  0xe7   : > { %v316_v51 = vadd.f32 %v315_v49, %v256_v48 }
  0xe9   : > { %v321_v54 = vmax.f32 %v316_v51, 0.0 }
  0xeb   : > { %v323_v56 = vpack.c.bf16 %v321_v54, %v320_v53 }
  0xed   : > { %351 = vmatpush.bf16.msra.mxu1 %v323_v56 }
  0xf1   : > { %352 = vmatpush.bf16.msra.mxu1 %v322_v58 }
  0xf4   : > { %558 = vmatmul.msk.bf16.vlgmr.msra.gmra.mxu1 %vm341_vm1, %v575_v59 }
 0x171   : > { %v354_v62 = vpop.f32.mrf.mxu1 }
 0x172   : > { %v355_v63 = vadd.f32 %v354_v62, %v329_v61 }
 0x174   : > { %v359_v3 = vmax.f32 %v355_v63, 0.0 }
 0x179   : > { %v356_v1 = vpop.f32.mrf.mxu1 }
 0x17a   : > { %v357_v2 = vadd.f32 %v356_v1, %v334_v0 }
 0x17c   : > { %v360_v4 = vmax.f32 %v357_v2, 0.0 }
 0x17e   : > { %v361_v5 = vpack.c.bf16 %v360_v4, %v359_v3 }
 0x180   : > { %366 = vxpose.xlu0.c.b16.start.end [1/1] (short) %v361_v5, 128 }
 0x22c   : > { %v374_v6 = vpop.trf.xlu0 }
 0x22d   : > { %563 = vmatmul.msk.bf16.vlgmr.msra.gmra.mxu2 %vm388_vm2, %v374_v6 }
 0x23c   : > { %v375_v7 = vpop.trf.xlu0 }
 0x23d   : > { %564 = vmatmul.msk.bf16.gmra.mxu2 %vm388_vm2, %v375_v7 }
 0x24c   : > { %v376_v8 = vpop.trf.xlu0 }
 0x24d   : > { %565 = vmatmul.msk.bf16.gmra.mxu2 %vm388_vm2, %v376_v8 }
 0x25c   : > { %v377_v9 = vpop.trf.xlu0 }
 0x25d   : > { %566 = vmatmul.msk.bf16.gmra.mxu2 %vm388_vm2, %v377_v9 }
 0x26c   : > { %v378_v10 = vpop.trf.xlu0 }
 0x26d   : > { %567 = vmatmul.msk.bf16.vlgmr.msra.gmra.mxu3 %vm388_vm2, %v378_v10 }
 0x27c   : > { %v379_v11 = vpop.trf.xlu0 }
 0x27d   : > { %568 = vmatmul.msk.bf16.gmra.mxu3 %vm388_vm2, %v379_v11 }
 0x28c   : > { %v380_v12 = vpop.trf.xlu0 }
 0x28d   : > { %569 = vmatmul.msk.bf16.gmra.mxu3 %vm388_vm2, %v380_v12 }
 0x29c   : > { %v381_v13 = vpop.trf.xlu0 }
 0x29d   : > { %570 = vmatmul.msk.bf16.gmra.mxu3 %vm388_vm2, %v381_v13 }
 0x2b0   : > { %v422_v15 = vpop.f32.mrf.mxu2 }
 0x2b1   : > { %v423_v16 = vadd.f32 %v590_v14, %v422_v15 }
 0x2b3   : > { %463 = vst.msk [vmem:[%s715_s23] sm:$0xff] %vm462_vm3, %v423_v16 }
 0x2b8   : > { %v424_v17 = vpop.f32.mrf.mxu2 }
 0x2b9   : > { %v425_v18 = vadd.f32 %v590_v14, %v424_v17 }
 0x2bb   : > { %464 = vst.msk [vmem:[%s715_s23 + $0x8] sm:$0xff] %vm462_vm3, %v425_v18 }
 0x2c0   : > { %v427_v19 = vpop.f32.mrf.mxu2 }
 0x2c1   : > { %v428_v20 = vadd.f32 %v590_v14, %v427_v19 }
 0x2c3   : > { %465 = vst.msk [vmem:[%s715_s23 + $0x10] sm:$0xff] %vm462_vm3, %v428_v20 }
 0x2c8   : > { %v429_v21 = vpop.f32.mrf.mxu2 }
 0x2c9   : > { %v430_v22 = vadd.f32 %v590_v14, %v429_v21 }
 0x2cb   : > { %466 = vst.msk [vmem:[%s715_s23 + $0x18] sm:$0xff] %vm462_vm3, %v430_v22 }
 0x2d0   : > { %v432_v23 = vpop.f32.mrf.mxu2 }
 0x2d1   : > { %v433_v24 = vadd.f32 %v590_v14, %v432_v23 }
 0x2d3   : > { %467 = vst.msk [vmem:[%s715_s23 + $0x20] sm:$0xff] %vm462_vm3, %v433_v24 }
 0x2d8   : > { %v434_v25 = vpop.f32.mrf.mxu2 }
 0x2d9   : > { %v435_v26 = vadd.f32 %v590_v14, %v434_v25 }
 0x2db   : > { %468 = vst.msk [vmem:[%s715_s23 + $0x28] sm:$0xff] %vm462_vm3, %v435_v26 }
 0x2e0   : > { %v437_v27 = vpop.f32.mrf.mxu2 }
 0x2e1   : > { %v438_v28 = vadd.f32 %v590_v14, %v437_v27 }
 0x2e3   : > { %469 = vst.msk [vmem:[%s715_s23 + $0x30] sm:$0xff] %vm462_vm3, %v438_v28 }
 0x2e8   : > { %v439_v29 = vpop.f32.mrf.mxu2 }
 0x2e9   : > { %v440_v30 = vadd.f32 %v590_v14, %v439_v29 }
 0x2eb   : > { %470 = vst.msk [vmem:[%s715_s23 + $0x38] sm:$0xff] %vm462_vm3, %v440_v30 }
 0x2f0   : > { %v442_v31 = vpop.f32.mrf.mxu3 }
 0x2f1   : > { %v443_v32 = vadd.f32 %v590_v14, %v442_v31 }
 0x2f3   : > { %471 = vst.msk [vmem:[%s715_s23 + $0x40] sm:$0xff] %vm462_vm3, %v443_v32 }
 0x2f8   : > { %v444_v33 = vpop.f32.mrf.mxu3 }
 0x2f9   : > { %v445_v34 = vadd.f32 %v590_v14, %v444_v33 }
 0x2fb   : > { %472 = vst.msk [vmem:[%s715_s23 + $0x48] sm:$0xff] %vm462_vm3, %v445_v34 }
 0x300   : > { %v447_v35 = vpop.f32.mrf.mxu3 }
 0x301   : > { %v448_v36 = vadd.f32 %v590_v14, %v447_v35 }
 0x303   : > { %473 = vst.msk [vmem:[%s715_s23 + $0x50] sm:$0xff] %vm462_vm3, %v448_v36 }
 0x308   : > { %v449_v37 = vpop.f32.mrf.mxu3 }
 0x309   : > { %v450_v38 = vadd.f32 %v590_v14, %v449_v37 }
 0x30b   : > { %474 = vst.msk [vmem:[%s715_s23 + $0x58] sm:$0xff] %vm462_vm3, %v450_v38 }
 0x310   : > { %v452_v39 = vpop.f32.mrf.mxu3 }
 0x311   : > { %v453_v40 = vadd.f32 %v590_v14, %v452_v39 }
 0x313   : > { %475 = vst.msk [vmem:[%s715_s23 + $0x60] sm:$0xff] %vm462_vm3, %v453_v40 }
 0x318   : > { %v454_v41 = vpop.f32.mrf.mxu3 }
 0x319   : > { %v455_v42 = vadd.f32 %v590_v14, %v454_v41 }
 0x31b   : > { %476 = vst.msk [vmem:[%s715_s23 + $0x68] sm:$0xff] %vm462_vm3, %v455_v42 }
 0x320   : > { %v457_v43 = vpop.f32.mrf.mxu3 }
 0x321   : > { %v458_v44 = vadd.f32 %v590_v14, %v457_v43 }
 0x323   : > { %477 = vst.msk [vmem:[%s715_s23 + $0x70] sm:$0xff] %vm462_vm3, %v458_v44 }
 0x328   : > { %v459_v45 = vpop.f32.mrf.mxu3 }
 0x329   : > { %v460_v46 = vadd.f32 %v590_v14, %v459_v45 }
 0x32b   : > { %478 = vst.msk [vmem:[%s715_s23 + $0x78] sm:$0xff] %vm462_vm3, %v460_v46 }
 0x32c PF: > { %s14_s15 = sadd.s32 1, %s597_s15  }
 0x32d   : > { %p11_p4 = scmp.ge.s32.totalorder %s14_s15, 4  }
 0x32f   :  { %13 = sbr.rel (!%p11_p4) target bundleno = 1 (0x1), region = 66 }

</bundles_post_ra>
